<compile_context>
chip_gen: v7x
topology: tpu7x:2x2x1
jax: 0.10.0
libtpu: 0.0.40
codegen_flags: <defaults>
</compile_context>

<pallas_src>
import functools

import jax
import jax.numpy as jnp
from jax.experimental import pallas as pl
from jax.experimental.pallas import tpu as pltpu


def _pick_spatial_tile(s_total, max_lanes=2048):
    """Largest spatial tile TS that divides S; prefer multiples of 128, <= max_lanes."""
    if s_total <= max_lanes:
        return s_total
    hi = max_lanes - (max_lanes % 128)
    for ts in range(hi, 127, -128):
        if s_total % ts == 0:
            return ts
    for ts in range(min(max_lanes, s_total), 0, -1):
        if s_total % ts == 0:
            return ts
    return s_total


def _se_scale_kernel(x_ref, wd_ref, bd_ref, wu_ref, bu_ref, scale_ref, acc_ref,
                     *, inv_s):
    # x_ref:     (1, C, TS)  one spatial tile of one sample
    # wd_ref:    (I, C), bd_ref: (I, 1)
    # wu_ref:    (C, I), bu_ref: (C, 1)
    # scale_ref: (1, C, 1)   output block, resident across the S grid axis
    # acc_ref:   (C, 1) f32  VMEM scratch accumulating the global mean
    s_idx = pl.program_id(1)

    @pl.when(s_idx == 0)
    def _init():
        acc_ref[...] = jnp.zeros_like(acc_ref)

    x = x_ref[0].astype(jnp.float32)                                   # (C, TS)
    # Scale each per-tile partial sum by 1/S: keeps the accumulator
    # well-conditioned even for very large spatial volumes (e.g. 128^3).
    acc_ref[...] += jnp.sum(x, axis=-1, keepdims=True) * inv_s

    @pl.when(s_idx == pl.num_programs(1) - 1)
    def _finalize():
        pooled = acc_ref[...]                                          # (C, 1)
        # 1x1x1 "down" conv as an MXU matvec + bias, then ReLU.
        hidden = jnp.dot(wd_ref[...].astype(jnp.float32), pooled,
                         preferred_element_type=jnp.float32)
        hidden = jnp.maximum(hidden + bd_ref[...].astype(jnp.float32), 0.0)  # (I, 1)
        # 1x1x1 "up" conv as an MXU matvec + bias, then sigmoid.
        logits = jnp.dot(wu_ref[...].astype(jnp.float32), hidden,
                         preferred_element_type=jnp.float32)
        logits = logits + bu_ref[...].astype(jnp.float32)              # (C, 1)
        scale_ref[0] = jax.nn.sigmoid(logits)                          # (C, 1) f32


def _se_apply_kernel(x_ref, scale_ref, out_ref):
    # x_ref/out_ref: (1, C, TS);  scale_ref: (1, C, 1) f32
    x = x_ref[0].astype(jnp.float32)
    out_ref[0] = (x * scale_ref[0]).astype(out_ref.dtype)


def se_block(inputs, w_down, b_down, w_up, b_up, *, max_tile_lanes=2048):
    """SEBlock forward.

    inputs: (N, C, D, H, W); w_down: (I, C); b_down: (I, 1); w_up: (C, I);
    b_up: (C, 1)   (Conv3d 1x1x1 weights with the trivial kernel dims dropped).
    """
    N, C, D, H, W = inputs.shape
    if not (D == H == W):
        raise ValueError(
            "SEBlock: F.avg_pool3d(inputs, kernel_size=inputs.size(-1)) is a "
            f"global pool only for cubic spatial dims; got D={D}, H={H}, W={W}.")
    S = D * H * W
    I = w_down.shape[0]

    TS = _pick_spatial_tile(S, max_tile_lanes)
    num_s = S // TS
    itemsize = jnp.dtype(inputs.dtype).itemsize

    x_flat = inputs.reshape(N, C, S)

    # ---- pass 1: global mean -> down/up FC -> sigmoid -> per-channel scale ----
    scale = pl.pallas_call(
        functools.partial(_se_scale_kernel, inv_s=1.0 / S),
        out_shape=jax.ShapeDtypeStruct((N, C, 1), jnp.float32),
        grid_spec=pltpu.PrefetchScalarGridSpec(
            num_scalar_prefetch=0,
            grid=(N, num_s),                          # reduction (S) axis last
            in_specs=[
                pl.BlockSpec((1, C, TS), lambda n, s: (n, 0, s)),
                pl.BlockSpec((I, C), lambda n, s: (0, 0)),
                pl.BlockSpec((I, 1), lambda n, s: (0, 0)),
                pl.BlockSpec((C, I), lambda n, s: (0, 0)),
                pl.BlockSpec((C, 1), lambda n, s: (0, 0)),
            ],
            out_specs=pl.BlockSpec((1, C, 1), lambda n, s: (n, 0, 0)),
            scratch_shapes=[pltpu.VMEM((C, 1), jnp.float32)],
        ),
        compiler_params=pltpu.CompilerParams(
            dimension_semantics=("parallel", "arbitrary")),
        cost_estimate=pl.CostEstimate(
            flops=int(N * (C * S + 2 * C * I)),
            transcendentals=int(N * C),
            bytes_accessed=int(N * C * S * itemsize + N * C * 4
                               + 2 * C * I * itemsize)),
    )(x_flat, w_down, b_down, w_up, b_up)

    # ---- pass 2: lane-dense channel-wise rescale, fully parallel grid ----
    out_flat = pl.pallas_call(
        _se_apply_kernel,
        out_shape=jax.ShapeDtypeStruct((N, C, S), inputs.dtype),
        grid_spec=pltpu.PrefetchScalarGridSpec(
            num_scalar_prefetch=0,
            grid=(N, num_s),
            in_specs=[
                pl.BlockSpec((1, C, TS), lambda n, s: (n, 0, s)),
                pl.BlockSpec((1, C, 1), lambda n, s: (n, 0, 0)),
            ],
            out_specs=pl.BlockSpec((1, C, TS), lambda n, s: (n, 0, s)),
        ),
        compiler_params=pltpu.CompilerParams(
            dimension_semantics=("parallel", "parallel")),
        cost_estimate=pl.CostEstimate(
            flops=int(N * C * S),
            transcendentals=0,
            bytes_accessed=int(2 * N * C * S * itemsize + N * C * 4)),
    )(x_flat, scale)

    return out_flat.reshape(N, C, D, H, W)


def _reference(inputs, w_down, b_down, w_up, b_up):
    # Pure-JAX reference of the PyTorch forward (global average pool path).
    pooled = jnp.mean(inputs, axis=(2, 3, 4))                      # (N, C)
    h = jnp.maximum(pooled @ w_down.T + b_down[:, 0], 0.0)         # (N, I)
    s = jax.nn.sigmoid(h @ w_up.T + b_up[:, 0])                    # (N, C)
    return inputs * s[:, :, None, None, None]


if __name__ == "__main__":
    key = jax.random.PRNGKey(0)
    k_x, k_wd, k_bd, k_wu, k_bu = jax.random.split(key, 5)

    # batch, input_channels, internal_neurons, cubic spatial extent
    N, C, I, D = 2, 16, 8, 8   # S = 512 spatial elements per channel

    x = jax.random.normal(k_x, (N, C, D, D, D), dtype=jnp.float32)
    # Conv3d weights are (out, in, 1, 1, 1); collapse the trivial kernel dims.
    w_down = jax.random.normal(k_wd, (I, C), dtype=jnp.float32) * 0.1
    b_down = jax.random.normal(k_bd, (I, 1), dtype=jnp.float32) * 0.1
    w_up = jax.random.normal(k_wu, (C, I), dtype=jnp.float32) * 0.1
    b_up = jax.random.normal(k_bu, (C, 1), dtype=jnp.float32) * 0.1

    out = jax.block_until_ready(se_block(x, w_down, b_down, w_up, b_up))

    ref = _reference(x, w_down, b_down, w_up, b_up)
    assert jnp.allclose(out, ref, atol=1e-5, rtol=1e-5), "mismatch vs reference"

    print("KERNEL_OK")
</pallas_src>

<mosaic_0001>
module attributes {stable_mosaic.version = 11 : i64} {
  func.func @_se_scale_kernel(%arg0: i32, %arg1: i32, %arg2: memref<1x16x512xf32, #tpu.memory_space<vmem>>, %arg3: memref<8x16xf32, #tpu.memory_space<vmem>>, %arg4: memref<8x1xf32, #tpu.memory_space<vmem>>, %arg5: memref<16x8xf32, #tpu.memory_space<vmem>>, %arg6: memref<16x1xf32, #tpu.memory_space<vmem>>, %arg7: memref<1x16x1xf32, #tpu.memory_space<vmem>>, %arg8: memref<16x1xf32, #tpu.memory_space<vmem>>) attributes {dimension_semantics = [#tpu.dimension_semantics<parallel>, #tpu.dimension_semantics<arbitrary>], iteration_bounds = array<i64: 2, 1>, scalar_prefetch = 0 : i64, scratch_operands = 1 : i64, tpu.core_type = #tpu.core_type<tc>, window_params = [{transform_indices = @transform_0, window_bounds = array<i64: 1, 16, 512>}, {pipeline_mode = #tpu.pipeline_mode<synchronous>, transform_indices = @transform_1, window_bounds = array<i64: 8, 16>}, {pipeline_mode = #tpu.pipeline_mode<synchronous>, transform_indices = @transform_2, window_bounds = array<i64: 8, 1>}, {pipeline_mode = #tpu.pipeline_mode<synchronous>, transform_indices = @transform_3, window_bounds = array<i64: 16, 8>}, {pipeline_mode = #tpu.pipeline_mode<synchronous>, transform_indices = @transform_4, window_bounds = array<i64: 16, 1>}, {transform_indices = @transform_5, window_bounds = array<i64: 1, 16, 1>}]} {
    %c0_i32 = arith.constant 0 : i32
    %0 = arith.cmpi eq, %arg1, %c0_i32 : i32
    %1 = arith.extui %0 : i1 to i32
    %c0_i32_0 = arith.constant 0 : i32
    %2 = arith.cmpi ne, %1, %c0_i32_0 : i32
    scf.if %2 {
      %cst_10 = arith.constant 0.000000e+00 : f32
      %15 = vector.broadcast %cst_10 : f32 to vector<16x1xf32>
      %c0_11 = arith.constant 0 : index
      %c0_12 = arith.constant 0 : index
      %16 = vector.load %arg8[%c0_11, %c0_12] : memref<16x1xf32, #tpu.memory_space<vmem>>, vector<16x1xf32>
      tpu.vector_store %arg8[%c0_11, %c0_12], %15 {strides = array<i32>} : memref<16x1xf32, #tpu.memory_space<vmem>>, vector<16x1xf32>,
    } else {
    }
    %c0 = arith.constant 0 : index
    %c0_1 = arith.constant 0 : index
    %c0_2 = arith.constant 0 : index
    %3 = vector.load %arg2[%c0, %c0_1, %c0_2] : memref<1x16x512xf32, #tpu.memory_space<vmem>>, vector<1x16x512xf32>
    %4 = vector.shape_cast %3 : vector<1x16x512xf32> to vector<16x512xf32>
    %c0_3 = arith.constant 0 : index
    %c0_4 = arith.constant 0 : index
    %5 = vector.load %arg8[%c0_3, %c0_4] : memref<16x1xf32, #tpu.memory_space<vmem>>, vector<16x1xf32>
    %cst = arith.constant dense<0.000000e+00> : vector<16xf32>
    %6 = vector.multi_reduction <add>, %4, %cst [1] : vector<16x512xf32> to vector<16xf32>
    %7 = vector.shape_cast %6 : vector<16xf32> to vector<16x1xf32>
    %cst_5 = arith.constant 0.001953125 : f32
    %8 = vector.broadcast %cst_5 : f32 to vector<16x1xf32>
    %9 = arith.mulf %7, %8 : vector<16x1xf32>
    %10 = arith.addf %5, %9 : vector<16x1xf32>
    %c0_6 = arith.constant 0 : index
    %c0_7 = arith.constant 0 : index
    %11 = vector.load %arg8[%c0_6, %c0_7] : memref<16x1xf32, #tpu.memory_space<vmem>>, vector<16x1xf32>
    tpu.vector_store %arg8[%c0_6, %c0_7], %10 {strides = array<i32>} : memref<16x1xf32, #tpu.memory_space<vmem>>, vector<16x1xf32>,
    %c0_i32_8 = arith.constant 0 : i32
    %12 = arith.cmpi eq, %arg1, %c0_i32_8 : i32
    %13 = arith.extui %12 : i1 to i32
    %c0_i32_9 = arith.constant 0 : i32
    %14 = arith.cmpi ne, %13, %c0_i32_9 : i32
    scf.if %14 {
      %c0_10 = arith.constant 0 : index
      %c0_11 = arith.constant 0 : index
      %15 = vector.load %arg8[%c0_10, %c0_11] : memref<16x1xf32, #tpu.memory_space<vmem>>, vector<16x1xf32>
      %c0_12 = arith.constant 0 : index
      %c0_13 = arith.constant 0 : index
      %16 = vector.load %arg3[%c0_12, %c0_13] : memref<8x16xf32, #tpu.memory_space<vmem>>, vector<8x16xf32>
      %cst_14 = arith.constant dense<0.000000e+00> : vector<8x1xf32>
      %17 = tpu.matmul %16, %15, %cst_14 {dimension_numbers = #tpu.dot_dimension_numbers<[1], [0], [0], [1], [0, 0, 1, 1], [], []>} : vector<8x16xf32>, vector<16x1xf32>, vector<8x1xf32> -> vector<8x1xf32>
      %c0_15 = arith.constant 0 : index
      %c0_16 = arith.constant 0 : index
      %18 = vector.load %arg4[%c0_15, %c0_16] : memref<8x1xf32, #tpu.memory_space<vmem>>, vector<8x1xf32>
      %19 = arith.addf %17, %18 : vector<8x1xf32>
      %cst_17 = arith.constant 0.000000e+00 : f32
      %20 = vector.broadcast %cst_17 : f32 to vector<8x1xf32>
      %21 = arith.maximumf %19, %20 : vector<8x1xf32>
      %c0_18 = arith.constant 0 : index
      %c0_19 = arith.constant 0 : index
      %22 = vector.load %arg5[%c0_18, %c0_19] : memref<16x8xf32, #tpu.memory_space<vmem>>, vector<16x8xf32>
      %cst_20 = arith.constant dense<0.000000e+00> : vector<16x1xf32>
      %23 = tpu.matmul %22, %21, %cst_20 {dimension_numbers = #tpu.dot_dimension_numbers<[1], [0], [0], [1], [0, 0, 1, 1], [], []>} : vector<16x8xf32>, vector<8x1xf32>, vector<16x1xf32> -> vector<16x1xf32>
      %c0_21 = arith.constant 0 : index
      %c0_22 = arith.constant 0 : index
      %24 = vector.load %arg6[%c0_21, %c0_22] : memref<16x1xf32, #tpu.memory_space<vmem>>, vector<16x1xf32>
      %25 = arith.addf %23, %24 : vector<16x1xf32>
      %26 = arith.negf %25 : vector<16x1xf32>
      %27 = math.exp %26 : vector<16x1xf32>
      %cst_23 = arith.constant 1.000000e+00 : f32
      %28 = vector.broadcast %cst_23 : f32 to vector<16x1xf32>
      %29 = arith.addf %28, %27 : vector<16x1xf32>
      %30 = arith.divf %28, %29 : vector<16x1xf32>
      %c0_24 = arith.constant 0 : index
      %c0_25 = arith.constant 0 : index
      %c0_26 = arith.constant 0 : index
      %31 = vector.load %arg7[%c0_24, %c0_25, %c0_26] : memref<1x16x1xf32, #tpu.memory_space<vmem>>, vector<1x16x1xf32>
      %32 = vector.shape_cast %31 : vector<1x16x1xf32> to vector<16x1xf32>
      %33 = vector.shape_cast %30 : vector<16x1xf32> to vector<1x16x1xf32>
      tpu.vector_store %arg7[%c0_24, %c0_25, %c0_26], %33 {strides = array<i32>} : memref<1x16x1xf32, #tpu.memory_space<vmem>>, vector<1x16x1xf32>,
    } else {
    }
    return
  }
  func.func @transform_0(%arg0: i32, %arg1: i32) -> (i32, i32, i32) {
    %c0_i32 = arith.constant 0 : i32
    %c0_i32_0 = arith.constant 0 : i32
    return %arg0, %c0_i32, %arg1 : i32, i32, i32
  }
  func.func @transform_1(%arg0: i32, %arg1: i32) -> (i32, i32) {
    %c0_i32 = arith.constant 0 : i32
    %c0_i32_0 = arith.constant 0 : i32
    %c0_i32_1 = arith.constant 0 : i32
    return %c0_i32, %c0_i32_0 : i32, i32
  }
  func.func @transform_2(%arg0: i32, %arg1: i32) -> (i32, i32) {
    %c0_i32 = arith.constant 0 : i32
    %c0_i32_0 = arith.constant 0 : i32
    %c0_i32_1 = arith.constant 0 : i32
    return %c0_i32, %c0_i32_0 : i32, i32
  }
  func.func @transform_3(%arg0: i32, %arg1: i32) -> (i32, i32) {
    %c0_i32 = arith.constant 0 : i32
    %c0_i32_0 = arith.constant 0 : i32
    %c0_i32_1 = arith.constant 0 : i32
    return %c0_i32, %c0_i32_0 : i32, i32
  }
  func.func @transform_4(%arg0: i32, %arg1: i32) -> (i32, i32) {
    %c0_i32 = arith.constant 0 : i32
    %c0_i32_0 = arith.constant 0 : i32
    %c0_i32_1 = arith.constant 0 : i32
    return %c0_i32, %c0_i32_0 : i32, i32
  }
  func.func @transform_5(%arg0: i32, %arg1: i32) -> (i32, i32, i32) {
    %c0_i32 = arith.constant 0 : i32
    %c0_i32_0 = arith.constant 0 : i32
    %c0_i32_1 = arith.constant 0 : i32
    return %arg0, %c0_i32, %c0_i32_0 : i32, i32, i32
  }
}

</mosaic_0001>

<bundles_post_ra>
// kernel: tpu_custom_call.1
= control target key start
LH: loop header
LB: loop body
LE: loop exit
PB: predicated region body
PF: predicated region fallthrough
CT: control target
= control target key end

     0   :  { %10 = vsyncpa [#allocation4], 0  ;;  %s931_s0 = inlined_call_operand.hbm [shape: f32[2,16,512], index: 0, kind: input, shape index: {}]   ;;  %s932_s1 = inlined_call_operand.vmem [shape: f32[8,16], index: 1, kind: input, shape index: {}]   ;;  %s933_s2 = inlined_call_operand.vmem [shape: f32[8,1], index: 2, kind: input, shape index: {}]   ;;  %s934_s3 = inlined_call_operand.vmem [shape: f32[16,8], index: 3, kind: input, shape index: {}]   ;;  %s935_s4 = inlined_call_operand.vmem [shape: f32[16,1], index: 4, kind: input, shape index: {}]   ;;  %s936_s5 = inlined_call_operand.vmem [shape: f32[2,16,1], index: 5, kind: output, shape index: {}]  }
   0x1   :  { %12 = vsyncpa [#allocation4 + $0x1], 0  ;;  %s783_s18 = smov 0   ;;  %s785_s19 = smov 0  }
   0x2   :  { %s787_s20 = smov 0   ;;  %s789_s21 = smov 0  }
   0x3   :  { %s791_s22 = smov 0   ;;  %s793_s23 = smov 0  }
   0x4 LB: > { %s556_s24 = sadd.s32 4294967295, %s745_s23   ;;  %s30_s25 = sadd.s32 1, %s741_s22  ;;  %s745_s23 = sphi %s793_s23, %s18_s23   ;;  %s741_s22 = sphi %s791_s22, %s944_s22   ;;  %s737_s21 = sphi %s789_s21, %s943_s21   ;;  %s733_s20 = sphi %s787_s20, %s942_s20   ;;  %s729_s19 = sphi %s785_s19, %s941_s19   ;;  %s725_s18 = sphi %s783_s18, %s940_s18  }
   0x5   : > { %p32_p0 = scmp.ge.s32.totalorder %s30_s25, 2  ;;  %s39_s26 = sadd.s32 1, %s733_s20 }
   0x6   : > { %p46_p1 = scmp.ne.s32.totalorder %s733_s20, %s729_s19  ;;  %p47_p2 = scmp.eq.s32.totalorder %s745_s23, 0 }
   0x7   : > { %s946_s25 = smov (%p32_p0, %s30_s25), 0  ;;  %p52_p4 = scmp.ne.s32.totalorder %s729_s19, %s725_s18 }
   0x8   : > { %p819_p3 = por %p47_p2, %p46_p1  ;;  %s34_s28 = ssub.s32 %s741_s22, %s946_s25 }
   0x9   : > { %p53_p5 = scmp.eq.s32.totalorder %s556_s24, 0  ;;  %p37_p6 = scmp.eq.s32.totalorder %s34_s28, 0 }
   0xa   : > { %p603_p8 = scmp.lt.s32.totalorder %s745_s23, 2  ;;  %s198_s6 = sand.u32 1, %s733_s20  }
   0xb   : > { %p826_p7 = por %p53_p5, %p52_p4  ;;  %s574_s7 = sshll.u32 %s741_s22, 10 }
   0xc   : > { %s832_s30 = scalar_select %p37_p6, %s733_s20, %s39_s26  }
   0xd   : > { %s560_s8 = sshll.u32 %s198_s6, 6  ;;  %s839_s11 = scalar_lea.hbm %s931_s0, %s574_s7 }
   0xe   : > { %s202_s12 = scalar_lea.vmem [#allocation3], %s560_s8  ;;  %p843_p9 = pnand %p603_p8, %p819_p3 }
   0xf   : > { %s211_s13 = sshll.u32 %s202_s12, 4  ;;  %s849_s15 = scalar_lea.sflag [#allocation4], %s198_s6  ;;  %s847_s13 = int_to_ptr.vmem [resolvable:$true] %s211_s13 }
  0x10   : > { %s665_s16 = scalar_lea.hbm %s839_s11, 1024  ;;  %p667_p11 = pneg %p843_p9 }
  0x11   : > { %p666_p10 = scmp.ne.s32.totalorder %s839_s11, %s665_s16  ;;  %s670_s24 = scalar_lea.hbm %s931_s0, 2048 }
  0x12   : > { %p671_p0 = scmp.lt.u32.totalorder %s839_s11, %s931_s0  ;;  %p672_p1 = scmp.lt.u32.totalorder %s670_s24, %s665_s16 }
  0x13   : > { %p668_p12 = pnand %p667_p11, %p666_p10  ;;  %p674_p3 = scmp.lt.u32.totalorder %s665_s16, %s839_s11 }
  0x14   : > { %p673_p2 = por %p672_p1, %p671_p0 }
  0x15   : > { %p669_p13 = pneg %p668_p12 }
  0x16   : > { %p675_p4 = por %p674_p3, %p673_p2 }
  0x18   : > { %p676_p5 = pnand %p675_p4, %p669_p13 }
  0x1a   : > { %679 = shalt.err (!%p676_p5)
}
  0x1b   : > { %s680_s28 = scalar_lea.vmem %s847_s13, 1024  ;;  %s747_s6 = smov [#allocation3]  }
  0x1c   : > { %p681_p6 = scmp.ne.s32.totalorder %s847_s13, %s680_s28  ;;  %s685_s7 = sshll.u32 %s747_s6, 4  ;;  %s686_s7 = int_to_ptr.vmem [resolvable:$false] %s685_s7 }
  0x1d   : > { %s687_s8 = scalar_lea.vmem %s686_s7, 2048  ;;  %p688_p12 = scmp.lt.s32.totalorder %s847_s13, %s686_s7 }
  0x1e   : > { %p683_p8 = pnand %p681_p6, %p667_p11  ;;  %p689_p0 = scmp.lt.s32.totalorder %s687_s8, %s680_s28 }
  0x20   : > { %p684_p10 = pneg %p683_p8  ;;  %p690_p1 = por %p689_p0, %p688_p12 }
  0x22   : > { %p691_p2 = pnand %p690_p1, %p684_p10 }
  0x24   : > { %694 = shalt.err (!%p691_p2)
}
  0x25   : > { %s748_s9 = smov 512   ;;  %s749_s10 = smov 32  }
  0x26   : > { %602 = dma.hbm_to_vmem [thread:$0]  (!%p843_p9), %s839_s11, 1024, %s847_s13, %s849_s15, %s748_s9, %s748_s9, %s749_s10  }
  0x27   : > { %p563_p11 = scmp.ge.s32.totalorder %s745_s23, 1  ;;  %p219_p13 = scmp.lt.s32.totalorder %s745_s23, 3 }
  0x29   : > { %p220_p3 = pnand %p563_p11, %p219_p13 }
  0x2a   : > { %s225_s12 = sand.u32 (!%p220_p3), 1, %s729_s19  }
  0x2b   : > { %223 = sbr.rel (%p220_p3) target bundleno = 681 (0x2a9), region = 40  ;;  %s564_s16 = sshll.u32 (!%p220_p3), %s225_s12, 6 }
  0x2c   : > { %s226_s17 = scalar_lea.sflag (!%p220_p3), [#allocation4], %s225_s12  ;;  %s229_s18 = scalar_lea.vmem (!%p220_p3), [#allocation3], %s564_s16 }
  0x32   : > { %720 = dma.done.wait (%p826_p7), %s226_s17, 1024  }
  0x33   : > { %722 = vsyncadd (%p826_p7), %s226_s17, 4294966272  ;;  %vm266_vm0 = vcmask 7168   ;;  %v750_v0 = vmov 0.0   ;;  %v269_v1 = vld [vmem:[%s229_s18] sm:$0xff]  ;;  %v270_v2 = vld [vmem:[%s229_s18 + $0x8] sm:$0xff]  ;;  %v751_v15 = vmov 0.0|0.0  }
  0x34   : > { %267 = vst.msk [vmem:[#allocation2] sm:$0xff] %vm266_vm0, %v750_v0  ;;  %268 = vst.msk [vmem:[#allocation2 + $0x8] sm:$0xff] %vm266_vm0, %v750_v0  ;;  %v271_v3 = vld [vmem:[%s229_s18 + $0x10] sm:$0xff]  ;;  %v279_v4 = vadd.f32 %v270_v2, %v269_v1  ;;  %v273_v5 = vld [vmem:[%s229_s18 + $0x20] sm:$0xff]  ;;  %594 = vmatprep.subr.bf16.mxu0 %v751_v15  ;;  %vm752_vm1 = vmmov 0   ;;  %vm303_vm2 = vcmask 130048  }
  0x35   : > { %v274_v6 = vld [vmem:[%s229_s18 + $0x28] sm:$0xff]  ;;  %v272_v7 = vld [vmem:[%s229_s18 + $0x18] sm:$0xff]  ;;  %v275_v8 = vld [vmem:[%s229_s18 + $0x30] sm:$0xff]  ;;  %586 = vmatprep.mubr.msk.f32.mxu0 %vm752_vm1, %v750_v0  ;;  %vm382_vm3 = vcmask 64512   ;;  %p257_p7 = scmp.lt.s32.totalorder %s737_s21, 1 }
  0x36   : > { %v284_v9 = vadd.f32 %v274_v6, %v273_v5  ;;  %v280_v10 = vadd.f32 %v279_v4, %v271_v3  ;;  %v276_v11 = vld [vmem:[%s229_s18 + $0x38] sm:$0xff]  ;;  %v301_v27 = vld [vmem:[%s932_s1] sm:$0xff] }
  0x37   : > { %v378_v28 = vld [vmem:[%s934_s3] sm:$0xff]  ;;  %v379_v34 = vld [vmem:[%s934_s3 + $0x8] sm:$0xff]  ;;  %s948_s21 = smov (!%p257_p7, %s737_s21), 1 }
  0x38   : > { %v285_v12 = vadd.f32 %v284_v9, %v275_v8  ;;  %v281_v13 = vadd.f32 %v280_v10, %v272_v7  ;;  %591 = vmatprep.mubr.msk.f32.mxu1 %vm382_vm3, %v378_v28  ;;  %v302_v29 = vld [vmem:[%s933_s2] sm:$0xff]  ;;  %v381_v35 = vld [vmem:[%s935_s4 + $0x8] sm:$0xff]  ;;  %s575_s9 = sshll.u32 %s948_s21, 4 }
  0x39   : > { %v380_v36 = vld [vmem:[%s935_s4] sm:$0xff]  ;;  %s261_s16 = scalar_lea.vmem %s936_s5, %s575_s9 }
  0x3a   : > { %282 = vadd.xlane.f32.xlu0 %v281_v13  ;;  %v286_v14 = vadd.f32 %v285_v12, %v276_v11 }
  0x3b   : > { %v277_v17 = vld [vmem:[#allocation2] sm:$0xff]  ;;  %v278_v21 = vld [vmem:[#allocation2 + $0x8] sm:$0xff] }
  0x3e   : > { %287 = vadd.xlane.f32.xlu0 %v286_v14 }
  0xc7   : > { %v283_v16 = vpop.xlane.xlu0 %282 }
  0xc8   : > { %v289_v18 = vmul.f32 0.001953125, %v283_v16 }
  0xca   : > { %v291_v19 = vadd.f32 %v289_v18, %v277_v17 }
  0xcb   : > { %v288_v20 = vpop.xlane.xlu0 %287 }
  0xcc   : > { %294 = vst.msk [vmem:[#allocation2] sm:$0xff] %vm266_vm0, %v291_v19  ;;  %v290_v22 = vmul.f32 0.001953125, %v288_v20 }
  0xce   : > { %v292_v23 = vadd.f32 %v290_v22, %v278_v21 }
  0xd0   : > { %295 = vst.msk [vmem:[#allocation2 + $0x8] sm:$0xff] %vm266_vm0, %v292_v23 }
  0xd3   : > { %v299_v24 = vld [vmem:[#allocation2] sm:$0xff] }
  0xd7   : > { %v300_v25 = vld [vmem:[#allocation2 + $0x8] sm:$0xff] }
  0xd8   : > { %v595_v26 = vpack.c.bf16 %v300_v25, %v299_v24 }
  0xda   : > { %596 = vmatpush3.bf16.msra.mxu0 %v595_v26 }
  0xdd   : > { %587 = vmatmul.mubr.msk.f32.vlgmr.msra.gmra.mrb[0].mxu0 %vm303_vm2, %v301_v27 }
 0x1b0   : > { %v373_v30 = vpop.f32.mrb[0].mxu0 }
 0x1b1   : > { %v374_v31 = vadd.f32 %v373_v30, %v302_v29  ;;  %v588_v32 = vpop.f32.mrb[1].mxu0 }
 0x1b3   : > { %v377_v33 = vmax.f32 %v374_v31, 0.0 }
 0x1b5   : > { %589 = vmatprep.subr.mxu1 %v377_v33 }
 0x1b6   : > { %590 = vmatpush3.msra.mxu1 %v377_v33 }
 0x1b7   : > { %592 = vmatmul.mubr.msk.f32.vlgmr.msra.gmra.mrb[0].mxu1 %vm382_vm3, %v379_v34 }
 0x28a   : > { %v593_v37 = vpop.f32.mrb[0].mxu1 }
 0x28b   : > { %v461_v38 = vadd.f32 %v593_v37, %v381_v35  ;;  %v455_v39 = vpop.f32.mrb[1].mxu1 }
 0x28c   : > { %v456_v40 = vadd.f32 %v455_v39, %v380_v36 }
 0x28d   : > { %v571_v41 = vmul.f32 -1.442695, %v461_v38 }
 0x28e   : > { %v570_v42 = vmul.f32 -1.442695, %v456_v40 }
 0x28f   : > { %657 = vpow2.f32 %v571_v41 }
 0x290   : > { %659 = vpow2.f32 %v570_v42 }
 0x299   : > { %v658_v43 = vpop.eup %657 }
 0x29a   : > { %v660_v44 = vpop.eup %659  ;;  %v471_v45 = vadd.f32 1.0, %v658_v43 }
 0x29b   : > { %v470_v46 = vadd.f32 1.0, %v660_v44 }
 0x29c   : > { %661 = vrcp.f32 %v471_v45 }
 0x29d   : > { %663 = vrcp.f32 %v470_v46 }
 0x2a6   : > { %v662_v47 = vpop.eup %661 }
 0x2a7   : > { %v664_v48 = vpop.eup %663  ;;  %477 = vst.msk [vmem:[%s261_s16 + $0x8] sm:$0xff] %vm266_vm0, %v662_v47 }
 0x2a8   : > { %476 = vst.msk [vmem:[%s261_s16] sm:$0xff] %vm266_vm0, %v664_v48 }
 0x2a9 PF: > { %s18_s23 = sadd.s32 1, %s745_s23   ;;  %s940_s18 = smov %s729_s19 }
 0x2aa   : > { %p15_p9 = scmp.ge.s32.totalorder %s18_s23, 4   ;;  %s941_s19 = smov %s733_s20 }
 0x2ab   : > { %s942_s20 = smov %s832_s30  ;;  %s943_s21 = smov %s741_s22 }
 0x2ac   : > { %s944_s22 = smov %s946_s25  ;;  %17 = sbr.rel (!%p15_p9) target bundleno = 4 (0x4), region = 88 }
 0x2b3   :  { %499 = vsyncpa [#allocation4], 1 }
 0x2b4   :  { %501 = vsyncpa [#allocation4 + $0x1], 1 }

</bundles_post_ra>
